<compile_context>
chip_gen: v7x
topology: tpu7x:2x2x1
jax: 0.10.0
libtpu: 0.0.40
codegen_flags: <defaults>
</compile_context>

<pallas_src>
import jax
import jax.numpy as jnp
from jax.experimental import pallas as pl
from jax.experimental.pallas import tpu as pltpu


def _round_up(x, m):
    return ((x + m - 1) // m) * m


def _choose_tb(B, max_tb=1024):
    """Batch tile: multiple of 8, <= max_tb, and >=2 grid steps when B allows
    (so v7x's two TensorCores both get work via the 'parallel' batch axis)."""
    if B <= 8:
        return 8
    half = _round_up((B + 1) // 2, 8)
    return min(max_tb, half)


def mlp_kernel(x_ref, w1_ref, b1_ref, w2_ref, b2_ref, h1_ref, h2_ref):
    # x_ref: [TB, in_num] f32 ; w1_ref: [in_num, hidden] bf16 ; b1_ref: [1, hidden] f32
    # w2_ref: [hidden, out_num] bf16 ; b2_ref: [1, out_num] f32
    x = x_ref[...].astype(jnp.bfloat16)          # in-kernel cast -> bf16 MXU feed

    # input_layer + sigmoid (f32 accumulation, f32 bias + activation)
    z1 = jnp.dot(x, w1_ref[...], preferred_element_type=jnp.float32) + b1_ref[...]
    h1 = jax.nn.sigmoid(z1)                      # f32, [TB, hidden]
    h1_ref[...] = h1.astype(h1_ref.dtype)

    # output_layer (no activation) -- re-feed MXU in bf16, accumulate f32
    z2 = jnp.dot(h1.astype(jnp.bfloat16), w2_ref[...],
                 preferred_element_type=jnp.float32) + b2_ref[...]
    h2_ref[...] = z2.astype(h2_ref.dtype)


def prepare_params(w1, b1, w2, b2):
    """One-time weight prep (hoisted out of the per-call path): bf16 cast for the
    MXU feeds, biases reshaped to (1, N) for free sublane-broadcast reads."""
    return (w1.astype(jnp.bfloat16),
            b1.astype(jnp.float32).reshape(1, -1),
            w2.astype(jnp.bfloat16),
            b2.astype(jnp.float32).reshape(1, -1))


@jax.jit
def net_forward(x, w1b, b1r, w2b, b2r):
    """x: [B, in_num] f32; w1b: [in_num, hidden] bf16; b1r: [1, hidden] f32;
    w2b: [hidden, out_num] bf16; b2r: [1, out_num] f32.  Returns (h_1, h_2) f32."""
    B, in_num = x.shape
    hidden = w1b.shape[1]
    out_num = w2b.shape[1]

    tb = _choose_tb(B)
    Bp = _round_up(B, tb)

    # Only pad the ragged tail; no copy at all when B divides evenly.
    xp = x if Bp == B else jnp.zeros((Bp, in_num), x.dtype).at[:B, :].set(x)

    grid = (Bp // tb,)

    cost = pl.CostEstimate(
        flops=2 * Bp * (in_num * hidden + hidden * out_num),
        transcendentals=Bp * hidden,  # sigmoid -> one exp per hidden unit
        bytes_accessed=(Bp * in_num * 4                 # x read (f32)
                        + Bp * hidden * 4               # h1 write (f32)
                        + Bp * out_num * 4              # h2 write (f32)
                        + in_num * hidden * 2 + hidden * out_num * 2   # bf16 weights
                        + (hidden + out_num) * 4),      # biases
    )

    h1, h2 = pl.pallas_call(
        mlp_kernel,
        out_shape=(
            jax.ShapeDtypeStruct((Bp, hidden), jnp.float32),
            jax.ShapeDtypeStruct((Bp, out_num), jnp.float32),
        ),
        grid=grid,
        in_specs=[
            pl.BlockSpec((tb, in_num),      lambda i: (i, 0)),   # x tile (pipelined)
            pl.BlockSpec((in_num, hidden),  lambda i: (0, 0)),   # W1 resident
            pl.BlockSpec((1, hidden),       lambda i: (0, 0)),   # b1 resident
            pl.BlockSpec((hidden, out_num), lambda i: (0, 0)),   # W2 resident
            pl.BlockSpec((1, out_num),      lambda i: (0, 0)),   # b2 resident
        ],
        out_specs=(
            pl.BlockSpec((tb, hidden),  lambda i: (i, 0)),       # h1 tile
            pl.BlockSpec((tb, out_num), lambda i: (i, 0)),       # h2 tile
        ),
        compiler_params=pltpu.CompilerParams(
            dimension_semantics=("parallel",),   # megacore split on v7x, no-op elsewhere
        ),
        cost_estimate=cost,
    )(xp, w1b, b1r, w2b, b2r)

    if Bp != B:
        return h1[:B], h2[:B]
    return h1, h2


def init_params(key, in_num, hidden_num, out_num):
    # Deterministic init mimicking PyTorch Linear default (uniform +/- 1/sqrt(fan_in)).
    k1, k2, k3, k4 = jax.random.split(key, 4)
    bound1 = 1.0 / (in_num ** 0.5)
    bound2 = 1.0 / (hidden_num ** 0.5)
    w1 = jax.random.uniform(k1, (in_num, hidden_num), jnp.float32, -bound1, bound1)
    b1 = jax.random.uniform(k2, (hidden_num,), jnp.float32, -bound1, bound1)
    w2 = jax.random.uniform(k3, (hidden_num, out_num), jnp.float32, -bound2, bound2)
    b2 = jax.random.uniform(k4, (out_num,), jnp.float32, -bound2, bound2)
    return w1, b1, w2, b2


if __name__ == "__main__":
    # Shapes consistent with Net(in_num, hidden_num, out_num); B=256 with tb=128
    # gives a 2-step grid (both v7x TCs busy) and no batch padding.
    B, in_num, hidden_num, out_num = 256, 16, 32, 8

    key = jax.random.PRNGKey(0)
    kx, kp = jax.random.split(key)
    x = jax.random.normal(kx, (B, in_num), jnp.float32)
    w1, b1, w2, b2 = init_params(kp, in_num, hidden_num, out_num)

    params = prepare_params(w1, b1, w2, b2)      # one-time, outside the hot path
    h1, h2 = net_forward(x, *params)
    jax.block_until_ready((h1, h2))

    # Reference check (apply the same bf16 rounding of MXU operands as the kernel).
    xb = x.astype(jnp.bfloat16).astype(jnp.float32)
    w1b = w1.astype(jnp.bfloat16).astype(jnp.float32)
    w2b = w2.astype(jnp.bfloat16).astype(jnp.float32)
    h1_ref = jax.nn.sigmoid(xb @ w1b + b1)
    h2_ref = h1_ref.astype(jnp.bfloat16).astype(jnp.float32) @ w2b + b2

    assert h1.shape == (B, hidden_num) and h2.shape == (B, out_num)
    assert jnp.allclose(h1, h1_ref, atol=1e-3, rtol=1e-3), float(jnp.abs(h1 - h1_ref).max())
    assert jnp.allclose(h2, h2_ref, atol=1e-3, rtol=1e-3), float(jnp.abs(h2 - h2_ref).max())

    print("KERNEL_OK")
</pallas_src>

<mosaic_0001>
module attributes {stable_mosaic.version = 11 : i64} {
  func.func @mlp_kernel(%arg0: i32, %arg1: memref<128x16xf32, #tpu.memory_space<vmem>>, %arg2: memref<16x32xbf16, #tpu.memory_space<vmem>>, %arg3: memref<1x32xf32, #tpu.memory_space<vmem>>, %arg4: memref<32x8xbf16, #tpu.memory_space<vmem>>, %arg5: memref<1x8xf32, #tpu.memory_space<vmem>>, %arg6: memref<128x32xf32, #tpu.memory_space<vmem>>, %arg7: memref<128x8xf32, #tpu.memory_space<vmem>>) attributes {dimension_semantics = [#tpu.dimension_semantics<parallel>], iteration_bounds = array<i64: 2>, scalar_prefetch = 0 : i64, scratch_operands = 0 : i64, tpu.core_type = #tpu.core_type<tc>, window_params = [{transform_indices = @transform_0, window_bounds = array<i64: 128, 16>}, {pipeline_mode = #tpu.pipeline_mode<synchronous>, transform_indices = @transform_1, window_bounds = array<i64: 16, 32>}, {pipeline_mode = #tpu.pipeline_mode<synchronous>, transform_indices = @transform_2, window_bounds = array<i64: 1, 32>}, {pipeline_mode = #tpu.pipeline_mode<synchronous>, transform_indices = @transform_3, window_bounds = array<i64: 32, 8>}, {pipeline_mode = #tpu.pipeline_mode<synchronous>, transform_indices = @transform_4, window_bounds = array<i64: 1, 8>}, {transform_indices = @transform_5, window_bounds = array<i64: 128, 32>}, {transform_indices = @transform_6, window_bounds = array<i64: 128, 8>}]} {
    %c0 = arith.constant 0 : index
    %c0_0 = arith.constant 0 : index
    %0 = vector.load %arg1[%c0, %c0_0] : memref<128x16xf32, #tpu.memory_space<vmem>>, vector<128x16xf32>
    %1 = arith.truncf %0 : vector<128x16xf32> to vector<128x16xbf16>
    %c0_1 = arith.constant 0 : index
    %c0_2 = arith.constant 0 : index
    %2 = vector.load %arg2[%c0_1, %c0_2] : memref<16x32xbf16, #tpu.memory_space<vmem>>, vector<16x32xbf16>
    %cst = arith.constant dense<0.000000e+00> : vector<128x32xf32>
    %3 = tpu.matmul %1, %2, %cst {dimension_numbers = #tpu.dot_dimension_numbers<[1], [0], [0], [1], [0, 0, 1, 1], [], []>} : vector<128x16xbf16>, vector<16x32xbf16>, vector<128x32xf32> -> vector<128x32xf32>
    %c0_3 = arith.constant 0 : index
    %c0_4 = arith.constant 0 : index
    %4 = vector.load %arg3[%c0_3, %c0_4] : memref<1x32xf32, #tpu.memory_space<vmem>>, vector<1x32xf32>
    %5 = vector.broadcast %4 : vector<1x32xf32> to vector<128x32xf32>
    %6 = arith.addf %3, %5 : vector<128x32xf32>
    %7 = arith.negf %6 : vector<128x32xf32>
    %8 = math.exp %7 : vector<128x32xf32>
    %cst_5 = arith.constant 1.000000e+00 : f32
    %9 = vector.broadcast %cst_5 : f32 to vector<128x32xf32>
    %10 = arith.addf %9, %8 : vector<128x32xf32>
    %11 = arith.divf %9, %10 : vector<128x32xf32>
    %c0_6 = arith.constant 0 : index
    %c0_7 = arith.constant 0 : index
    %12 = vector.load %arg6[%c0_6, %c0_7] : memref<128x32xf32, #tpu.memory_space<vmem>>, vector<128x32xf32>
    tpu.vector_store %arg6[%c0_6, %c0_7], %11 {strides = array<i32>} : memref<128x32xf32, #tpu.memory_space<vmem>>, vector<128x32xf32>,
    %13 = arith.truncf %11 : vector<128x32xf32> to vector<128x32xbf16>
    %c0_8 = arith.constant 0 : index
    %c0_9 = arith.constant 0 : index
    %14 = vector.load %arg4[%c0_8, %c0_9] : memref<32x8xbf16, #tpu.memory_space<vmem>>, vector<32x8xbf16>
    %cst_10 = arith.constant dense<0.000000e+00> : vector<128x8xf32>
    %15 = tpu.matmul %13, %14, %cst_10 {dimension_numbers = #tpu.dot_dimension_numbers<[1], [0], [0], [1], [0, 0, 1, 1], [], []>} : vector<128x32xbf16>, vector<32x8xbf16>, vector<128x8xf32> -> vector<128x8xf32>
    %c0_11 = arith.constant 0 : index
    %c0_12 = arith.constant 0 : index
    %16 = vector.load %arg5[%c0_11, %c0_12] : memref<1x8xf32, #tpu.memory_space<vmem>>, vector<1x8xf32>
    %17 = vector.broadcast %16 : vector<1x8xf32> to vector<128x8xf32>
    %18 = arith.addf %15, %17 : vector<128x8xf32>
    %c0_13 = arith.constant 0 : index
    %c0_14 = arith.constant 0 : index
    %19 = vector.load %arg7[%c0_13, %c0_14] : memref<128x8xf32, #tpu.memory_space<vmem>>, vector<128x8xf32>
    tpu.vector_store %arg7[%c0_13, %c0_14], %18 {strides = array<i32>} : memref<128x8xf32, #tpu.memory_space<vmem>>, vector<128x8xf32>,
    return
  }
  func.func @transform_0(%arg0: i32) -> (i32, i32) {
    %c0_i32 = arith.constant 0 : i32
    %c0_i32_0 = arith.constant 0 : i32
    return %arg0, %c0_i32 : i32, i32
  }
  func.func @transform_1(%arg0: i32) -> (i32, i32) {
    %c0_i32 = arith.constant 0 : i32
    %c0_i32_0 = arith.constant 0 : i32
    %c0_i32_1 = arith.constant 0 : i32
    return %c0_i32, %c0_i32_0 : i32, i32
  }
  func.func @transform_2(%arg0: i32) -> (i32, i32) {
    %c0_i32 = arith.constant 0 : i32
    %c0_i32_0 = arith.constant 0 : i32
    %c0_i32_1 = arith.constant 0 : i32
    return %c0_i32, %c0_i32_0 : i32, i32
  }
  func.func @transform_3(%arg0: i32) -> (i32, i32) {
    %c0_i32 = arith.constant 0 : i32
    %c0_i32_0 = arith.constant 0 : i32
    %c0_i32_1 = arith.constant 0 : i32
    return %c0_i32, %c0_i32_0 : i32, i32
  }
  func.func @transform_4(%arg0: i32) -> (i32, i32) {
    %c0_i32 = arith.constant 0 : i32
    %c0_i32_0 = arith.constant 0 : i32
    %c0_i32_1 = arith.constant 0 : i32
    return %c0_i32, %c0_i32_0 : i32, i32
  }
  func.func @transform_5(%arg0: i32) -> (i32, i32) {
    %c0_i32 = arith.constant 0 : i32
    %c0_i32_0 = arith.constant 0 : i32
    return %arg0, %c0_i32 : i32, i32
  }
  func.func @transform_6(%arg0: i32) -> (i32, i32) {
    %c0_i32 = arith.constant 0 : i32
    %c0_i32_0 = arith.constant 0 : i32
    return %arg0, %c0_i32 : i32, i32
  }
}

</mosaic_0001>

<bundles_post_ra>
// kernel: net_forward.1
= control target key start
LH: loop header
LB: loop body
LE: loop exit
PB: predicated region body
PF: predicated region fallthrough
CT: control target
= control target key end

     0   :  { %s1028_s21 = smov 0   ;;  %s1188_s0 = inlined_call_operand.vmem [shape: f32[256,16], index: 0, kind: input, shape index: {}]   ;;  %s1189_s1 = inlined_call_operand.vmem [shape: bf16[16,32], index: 1, kind: input, shape index: {}]   ;;  %s1190_s2 = inlined_call_operand.vmem [shape: f32[1,32], index: 2, kind: input, shape index: {}]   ;;  %s1191_s3 = inlined_call_operand.vmem [shape: bf16[32,8], index: 3, kind: input, shape index: {}]   ;;  %s1192_s4 = inlined_call_operand.vmem [shape: f32[1,8], index: 4, kind: input, shape index: {}]   ;;  %s1193_s5 = inlined_call_operand.vmem [shape: f32[256,32], index: 5, kind: output, shape index: {0}]   ;;  %s1194_s6 = inlined_call_operand.vmem [shape: f32[256,8], index: 6, kind: output, shape index: {1}]  }
   0x1 LB: > { %s803_s22 = sadd.s32 4294967295, %s991_s21   ;;  %p807_p0 = scmp.ge.s32.totalorder %s991_s21, 1  ;;  %s991_s21 = sphi %s1028_s21, %s17_s21  }
   0x2   : > { %p216_p1 = scmp.lt.s32.totalorder %s991_s21, 3 }
   0x4   : > { %p217_p2 = pnand %p807_p0, %p216_p1 }
   0x5   : > { %v918_v0 = vld [vmem:[%s1189_s1] sm:$0xff] (!%p217_p2)   ;;  %s808_s25 = sshll.u32 (!%p217_p2), %s803_s22, 4  ;;  %vm309_vm0 = vcmask (!%p217_p2), 130048   ;;  %v920_v26 = vld [vmem:[%s1191_s3 + $0x8] sm:$0xff] (!%p217_p2)   ;;  %vm527_vm1 = vcmask (!%p217_p2), 261120   ;;  %vm696_vm2 = vcmask (!%p217_p2), 64512  }
   0x6   : > { %220 = sbr.rel (%p217_p2) target bundleno = 509 (0x1fd), region = 40  ;;  %p252_p3 = scmp.lt.s32.totalorder (!%p217_p2), %s808_s25, 31  ;;  %872 = vmatprep.subr.bf16.mxu0 (!%p217_p2), %v918_v0  ;;  %v919_v25 = vld [vmem:[%s1191_s3] sm:$0xff] (!%p217_p2)  }
   0x7   : > { %873 = vmatpush3.bf16.msra.mxu0 (!%p217_p2), %v918_v0  ;;  %890 = vmatprep.subr.bf16.mxu1 (!%p217_p2), %v919_v25  ;;  %v1080_v27 = vld [vmem:[%s1190_s2] ss:$0 sm:$0xff] (!%p217_p2) }
   0x8   : > { %891 = vmatpush3.bf16.msra.mxu1 (!%p217_p2), %v919_v25 }
   0x9   : > { %892 = vmatprep.subr.bf16.mxu1 (!%p217_p2), %v920_v26 }
   0xc   : > { %893 = vmatpush3.bf16.msra.mxu1 (!%p217_p2), %v920_v26 }
   0xd   : > { %s1196_s25 = smov (!%p252_p3, %s808_s25), 31 }
   0xe   : > { %s1039_s26 = sshll.u32 %s1196_s25, 3 }
   0xf   : > { %s1045_s29 = scalar_lea.vmem %s1188_s0, %s1039_s26  ;;  %s1099_s14 = scalar_lea.vmem %s1193_s5, %s1039_s26 }
  0x10   : > { %v270_v1 = vld [vmem:[%s1045_s29] sm:$0xff]  ;;  %v271_v2 = vld [vmem:[%s1045_s29 + $0x8] sm:$0xff]  ;;  %v272_v3 = vld [vmem:[%s1045_s29 + $0x10] sm:$0xff]  ;;  %s1151_s19 = scalar_lea.vmem %s1194_s6, %s1039_s26 }
  0x11   : > { %v286_v4 = vpack.c.bf16 %v271_v2, %v270_v1  ;;  %v273_v5 = vld [vmem:[%s1045_s29 + $0x18] sm:$0xff]  ;;  %v274_v6 = vld [vmem:[%s1045_s29 + $0x20] sm:$0xff]  ;;  %v275_v7 = vld [vmem:[%s1045_s29 + $0x28] sm:$0xff] }
  0x12   : > { %v287_v8 = vpack.c.bf16 %v273_v5, %v272_v3  ;;  %v288_v9 = vpack.c.bf16 %v275_v7, %v274_v6  ;;  %v276_v10 = vld [vmem:[%s1045_s29 + $0x30] sm:$0xff]  ;;  %v277_v11 = vld [vmem:[%s1045_s29 + $0x38] sm:$0xff]  ;;  %v278_v12 = vld [vmem:[%s1045_s29 + $0x40] sm:$0xff] }
  0x13   : > { %874 = vmatprep.mubr.msk.bf16.mxu0 %vm309_vm0, %v286_v4  ;;  %v279_v13 = vld [vmem:[%s1045_s29 + $0x48] sm:$0xff]  ;;  %v289_v14 = vpack.c.bf16 %v277_v11, %v276_v10  ;;  %v280_v16 = vld [vmem:[%s1045_s29 + $0x50] sm:$0xff]  ;;  %v281_v17 = vld [vmem:[%s1045_s29 + $0x58] sm:$0xff] }
  0x14   : > { %875 = vmatmul.mubr.msk.bf16.vlgmr.msra.gmra.mrb[0].mxu0 %vm309_vm0, %v287_v8  ;;  %v290_v15 = vpack.c.bf16 %v279_v13, %v278_v12  ;;  %v282_v18 = vld [vmem:[%s1045_s29 + $0x60] sm:$0xff]  ;;  %v283_v19 = vld [vmem:[%s1045_s29 + $0x68] sm:$0xff]  ;;  %v291_v20 = vpack.c.bf16 %v281_v17, %v280_v16  ;;  %v284_v22 = vld [vmem:[%s1045_s29 + $0x70] sm:$0xff] }
  0x15   : > { %878 = vmatprep.mubr.msk.bf16.mxu0 %vm309_vm0, %v288_v9  ;;  %v292_v21 = vpack.c.bf16 %v283_v19, %v282_v18  ;;  %v285_v23 = vld [vmem:[%s1045_s29 + $0x78] sm:$0xff] }
  0x16   : > { %v293_v24 = vpack.c.bf16 %v285_v23, %v284_v22 }
  0x1c   : > { %879 = vmatmul.mubr.msk.bf16.gmra.mrb[4].mxu0 %vm309_vm0, %v289_v14 }
  0x1d   : > { %882 = vmatprep.mubr.msk.bf16.mxu0 %vm309_vm0, %v290_v15 }
  0x24   : > { %883 = vmatmul.mubr.msk.bf16.gmra.mrb[8].mxu0 %vm309_vm0, %v291_v20 }
  0x25   : > { %886 = vmatprep.mubr.msk.bf16.mxu0 %vm309_vm0, %v292_v21 }
  0x2c   : > { %887 = vmatmul.mubr.msk.bf16.gmra.mrb[12].mxu0 %vm309_vm0, %v293_v24 }
  0xe7   : > { %v876_v28 = vpop.f32.mrb[0].mxu0 }
  0xe8   : > { %v377_v29 = vadd.f32 %v876_v28, %v1080_v27  ;;  %v368_v30 = vpop.f32.mrb[1].mxu0 }
  0xe9   : > { %v369_v31 = vadd.f32 %v1080_v27, %v368_v30  ;;  %v877_v32 = vpop.f32.mrb[2].mxu0 }
  0xea   : > { %v826_v33 = vmul.f32 -1.442695, %v377_v29  ;;  %v380_v34 = vadd.f32 %v877_v32, %v1080_v27  ;;  %v371_v35 = vpop.f32.mrb[3].mxu0 }
  0xeb   : > { %v824_v36 = vmul.f32 -1.442695, %v369_v31  ;;  %v372_v37 = vadd.f32 %v1080_v27, %v371_v35 }
  0xec   : > { %921 = vpow2.f32 %v826_v33  ;;  %v827_v38 = vmul.f32 -1.442695, %v380_v34 }
  0xed   : > { %923 = vpow2.f32 %v824_v36  ;;  %v825_v39 = vmul.f32 -1.442695, %v372_v37 }
  0xee   : > { %925 = vpow2.f32 %v827_v38 }
  0xef   : > { %927 = vpow2.f32 %v825_v39  ;;  %v880_v40 = vpop.f32.mrb[4].mxu0 }
  0xf0   : > { %v393_v41 = vadd.f32 %v880_v40, %v1080_v27  ;;  %v384_v42 = vpop.f32.mrb[5].mxu0 }
  0xf1   : > { %v385_v43 = vadd.f32 %v1080_v27, %v384_v42  ;;  %v881_v44 = vpop.f32.mrb[6].mxu0 }
  0xf2   : > { %v830_v45 = vmul.f32 -1.442695, %v393_v41  ;;  %v396_v46 = vadd.f32 %v881_v44, %v1080_v27  ;;  %v387_v47 = vpop.f32.mrb[7].mxu0 }
  0xf3   : > { %v828_v48 = vmul.f32 -1.442695, %v385_v43  ;;  %v388_v49 = vadd.f32 %v1080_v27, %v387_v47 }
  0xf4   : > { %929 = vpow2.f32 %v830_v45  ;;  %v831_v50 = vmul.f32 -1.442695, %v396_v46 }
  0xf5   : > { %931 = vpow2.f32 %v828_v48  ;;  %v829_v51 = vmul.f32 -1.442695, %v388_v49 }
  0xf6   : > { %v922_v52 = vpop.eup %921  ;;  %933 = vpow2.f32 %v831_v50 }
  0xf7   : > { %v924_v53 = vpop.eup %923  ;;  %v481_v54 = vadd.f32 1.0, %v922_v52  ;;  %935 = vpow2.f32 %v829_v51  ;;  %v884_v55 = vpop.f32.mrb[8].mxu0 }
  0xf8   : > { %v926_v56 = vpop.eup %925  ;;  %v479_v57 = vadd.f32 1.0, %v924_v53  ;;  %v409_v58 = vadd.f32 %v884_v55, %v1080_v27  ;;  %v400_v59 = vpop.f32.mrb[9].mxu0 }
  0xf9   : > { %v928_v60 = vpop.eup %927  ;;  %937 = vrcp.f32 %v481_v54  ;;  %v482_v61 = vadd.f32 1.0, %v926_v56  ;;  %v401_v62 = vadd.f32 %v1080_v27, %v400_v59  ;;  %v885_v63 = vpop.f32.mrb[10].mxu0 }
  0xfa   : > { %939 = vrcp.f32 %v479_v57  ;;  %v480_v0 = vadd.f32 1.0, %v928_v60  ;;  %v834_v1 = vmul.f32 -1.442695, %v409_v58  ;;  %v412_v2 = vadd.f32 %v885_v63, %v1080_v27  ;;  %v403_v3 = vpop.f32.mrb[11].mxu0 }
  0xfb   : > { %941 = vrcp.f32 %v482_v61  ;;  %v832_v4 = vmul.f32 -1.442695, %v401_v62  ;;  %v404_v5 = vadd.f32 %v1080_v27, %v403_v3 }
  0xfc   : > { %943 = vrcp.f32 %v480_v0  ;;  %v835_v6 = vmul.f32 -1.442695, %v412_v2 }
  0xfd   : > { %945 = vpow2.f32 %v834_v1  ;;  %v833_v7 = vmul.f32 -1.442695, %v404_v5 }
  0xfe   : > { %v930_v8 = vpop.eup %929  ;;  %947 = vpow2.f32 %v832_v4  ;;  %v840_v4 = vld [vmem:[%s1192_s4] ss:$0 sm:$0xff] }
  0xff   : > { %v932_v9 = vpop.eup %931  ;;  %v485_v10 = vadd.f32 1.0, %v930_v8  ;;  %949 = vpow2.f32 %v835_v6  ;;  %v888_v11 = vpop.f32.mrb[12].mxu0 }
 0x100   : > { %v934_v12 = vpop.eup %933  ;;  %v483_v13 = vadd.f32 1.0, %v932_v9  ;;  %951 = vpow2.f32 %v833_v7  ;;  %v425_v14 = vadd.f32 %v888_v11, %v1080_v27  ;;  %v416_v15 = vpop.f32.mrb[13].mxu0 }
 0x101   : > { %v936_v16 = vpop.eup %935  ;;  %953 = vrcp.f32 %v485_v10  ;;  %v486_v17 = vadd.f32 1.0, %v934_v12  ;;  %v417_v18 = vadd.f32 %v1080_v27, %v416_v15  ;;  %v889_v19 = vpop.f32.mrb[14].mxu0 }
 0x102   : > { %955 = vrcp.f32 %v483_v13  ;;  %v484_v20 = vadd.f32 1.0, %v936_v16  ;;  %v838_v21 = vmul.f32 -1.442695, %v425_v14  ;;  %v428_v22 = vadd.f32 %v889_v19, %v1080_v27  ;;  %v419_v23 = vpop.f32.mrb[15].mxu0 }
 0x103   : > { %v938_v24 = vpop.eup %937  ;;  %957 = vrcp.f32 %v486_v17  ;;  %v836_v25 = vmul.f32 -1.442695, %v417_v18  ;;  %v420_v26 = vadd.f32 %v1080_v27, %v419_v23 }
 0x104   : > { %v940_v28 = vpop.eup %939  ;;  %530 = vst.msk [vmem:[%s1099_s14 + $0x10] sm:$0xff] %vm527_vm1, %v938_v24  ;;  %959 = vrcp.f32 %v484_v20  ;;  %v839_v29 = vmul.f32 -1.442695, %v428_v22 }
 0x105   : > { %v942_v30 = vpop.eup %941  ;;  %528 = vst.msk [vmem:[%s1099_s14] sm:$0xff] %vm527_vm1, %v940_v28  ;;  %961 = vpow2.f32 %v838_v21  ;;  %v837_v31 = vmul.f32 -1.442695, %v420_v26 }
 0x106   : > { %v944_v32 = vpop.eup %943  ;;  %531 = vst.msk [vmem:[%s1099_s14 + $0x18] sm:$0xff] %vm527_vm1, %v942_v30  ;;  %963 = vpow2.f32 %v836_v25  ;;  %v545_v33 = vpack.c.bf16 %v942_v30, %v938_v24 }
 0x107   : > { %v946_v34 = vpop.eup %945  ;;  %529 = vst.msk [vmem:[%s1099_s14 + $0x8] sm:$0xff] %vm527_vm1, %v944_v32  ;;  %965 = vpow2.f32 %v839_v29  ;;  %v544_v27 = vpack.c.bf16 %v944_v32, %v940_v28 }
 0x108   : > { %v948_v35 = vpop.eup %947  ;;  %v489_v36 = vadd.f32 1.0, %v946_v34  ;;  %967 = vpow2.f32 %v837_v31 }
 0x109   : > { %v950_v37 = vpop.eup %949  ;;  %v487_v38 = vadd.f32 1.0, %v948_v35  ;;  %894 = vmatprep.mubr.msk.bf16.mxu1 %vm527_vm1, %v544_v27 }
 0x10a   : > { %v952_v39 = vpop.eup %951  ;;  %969 = vrcp.f32 %v489_v36  ;;  %v490_v40 = vadd.f32 1.0, %v950_v37  ;;  %895 = vmatmul.mubr.msk.bf16.vlgmr.msra.gmra.mrb[0].mxu1 %vm527_vm1, %v545_v33 }
 0x10b   : > { %v954_v41 = vpop.eup %953  ;;  %971 = vrcp.f32 %v487_v38  ;;  %v488_v42 = vadd.f32 1.0, %v952_v39 }
 0x10c   : > { %v956_v43 = vpop.eup %955  ;;  %534 = vst.msk [vmem:[%s1099_s14 + $0x30] sm:$0xff] %vm527_vm1, %v954_v41  ;;  %973 = vrcp.f32 %v490_v40 }
 0x10d   : > { %v958_v44 = vpop.eup %957  ;;  %532 = vst.msk [vmem:[%s1099_s14 + $0x20] sm:$0xff] %vm527_vm1, %v956_v43  ;;  %975 = vrcp.f32 %v488_v42 }
 0x10e   : > { %v960_v45 = vpop.eup %959  ;;  %535 = vst.msk [vmem:[%s1099_s14 + $0x38] sm:$0xff] %vm527_vm1, %v958_v44  ;;  %v547_v46 = vpack.c.bf16 %v958_v44, %v954_v41 }
 0x10f   : > { %v962_v47 = vpop.eup %961  ;;  %533 = vst.msk [vmem:[%s1099_s14 + $0x28] sm:$0xff] %vm527_vm1, %v960_v45  ;;  %v546_v48 = vpack.c.bf16 %v960_v45, %v956_v43 }
 0x110   : > { %v964_v49 = vpop.eup %963  ;;  %v493_v50 = vadd.f32 1.0, %v962_v47 }
 0x111   : > { %v966_v51 = vpop.eup %965  ;;  %v491_v52 = vadd.f32 1.0, %v964_v49  ;;  %898 = vmatprep.mubr.msk.bf16.mxu1 %vm527_vm1, %v546_v48 }
 0x112   : > { %v968_v53 = vpop.eup %967  ;;  %977 = vrcp.f32 %v493_v50  ;;  %v494_v54 = vadd.f32 1.0, %v966_v51  ;;  %899 = vmatmul.mubr.msk.bf16.gmra.mrb[4].mxu1 %vm527_vm1, %v547_v46 }
 0x113   : > { %979 = vrcp.f32 %v491_v52  ;;  %v492_v55 = vadd.f32 1.0, %v968_v53 }
 0x114   : > { %v970_v56 = vpop.eup %969  ;;  %981 = vrcp.f32 %v494_v54 }
 0x115   : > { %v972_v57 = vpop.eup %971  ;;  %538 = vst.msk [vmem:[%s1099_s14 + $0x50] sm:$0xff] %vm527_vm1, %v970_v56  ;;  %983 = vrcp.f32 %v492_v55 }
 0x116   : > { %v974_v58 = vpop.eup %973  ;;  %536 = vst.msk [vmem:[%s1099_s14 + $0x40] sm:$0xff] %vm527_vm1, %v972_v57 }
 0x117   : > { %v976_v59 = vpop.eup %975  ;;  %539 = vst.msk [vmem:[%s1099_s14 + $0x58] sm:$0xff] %vm527_vm1, %v974_v58  ;;  %v549_v60 = vpack.c.bf16 %v974_v58, %v970_v56 }
 0x118   : > { %537 = vst.msk [vmem:[%s1099_s14 + $0x48] sm:$0xff] %vm527_vm1, %v976_v59  ;;  %v548_v61 = vpack.c.bf16 %v976_v59, %v972_v57 }
 0x11a   : > { %902 = vmatprep.mubr.msk.bf16.mxu1 %vm527_vm1, %v548_v61 }
 0x11b   : > { %903 = vmatmul.mubr.msk.bf16.gmra.mrb[8].mxu1 %vm527_vm1, %v549_v60 }
 0x11c   : > { %v978_v62 = vpop.eup %977 }
 0x11d   : > { %v980_v63 = vpop.eup %979  ;;  %542 = vst.msk [vmem:[%s1099_s14 + $0x70] sm:$0xff] %vm527_vm1, %v978_v62 }
 0x11e   : > { %v982_v0 = vpop.eup %981  ;;  %540 = vst.msk [vmem:[%s1099_s14 + $0x60] sm:$0xff] %vm527_vm1, %v980_v63 }
 0x11f   : > { %v984_v1 = vpop.eup %983  ;;  %543 = vst.msk [vmem:[%s1099_s14 + $0x78] sm:$0xff] %vm527_vm1, %v982_v0  ;;  %v551_v2 = vpack.c.bf16 %v982_v0, %v978_v62 }
 0x120   : > { %541 = vst.msk [vmem:[%s1099_s14 + $0x68] sm:$0xff] %vm527_vm1, %v984_v1  ;;  %v550_v3 = vpack.c.bf16 %v984_v1, %v980_v63 }
 0x122   : > { %906 = vmatprep.mubr.msk.bf16.mxu1 %vm527_vm1, %v550_v3 }
 0x123   : > { %907 = vmatmul.mubr.msk.bf16.gmra.mrb[12].mxu1 %vm527_vm1, %v551_v2 }
 0x1dd   : > { %v896_v5 = vpop.f32.mrb[0].mxu1 }
 0x1de   : > { %v642_v6 = vadd.f32 %v896_v5, %v840_v4  ;;  %v633_v7 = vpop.f32.mrb[1].mxu1 }
 0x1df   : > { %v634_v8 = vadd.f32 %v840_v4, %v633_v7  ;;  %v897_v9 = vpop.f32.mrb[2].mxu1 }
 0x1e0   : > { %699 = vst.msk [vmem:[%s1151_s19 + $0x10] sm:$0xff] %vm696_vm2, %v642_v6  ;;  %v645_v10 = vadd.f32 %v897_v9, %v840_v4  ;;  %v636_v11 = vpop.f32.mrb[3].mxu1 }
 0x1e1   : > { %697 = vst.msk [vmem:[%s1151_s19] sm:$0xff] %vm696_vm2, %v634_v8  ;;  %v637_v12 = vadd.f32 %v840_v4, %v636_v11 }
 0x1e2   : > { %700 = vst.msk [vmem:[%s1151_s19 + $0x18] sm:$0xff] %vm696_vm2, %v645_v10 }
 0x1e3   : > { %698 = vst.msk [vmem:[%s1151_s19 + $0x8] sm:$0xff] %vm696_vm2, %v637_v12 }
 0x1e5   : > { %v900_v13 = vpop.f32.mrb[4].mxu1 }
 0x1e6   : > { %v658_v14 = vadd.f32 %v900_v13, %v840_v4  ;;  %v649_v15 = vpop.f32.mrb[5].mxu1 }
 0x1e7   : > { %v650_v16 = vadd.f32 %v840_v4, %v649_v15  ;;  %v901_v17 = vpop.f32.mrb[6].mxu1 }
 0x1e8   : > { %703 = vst.msk [vmem:[%s1151_s19 + $0x30] sm:$0xff] %vm696_vm2, %v658_v14  ;;  %v661_v18 = vadd.f32 %v901_v17, %v840_v4  ;;  %v652_v19 = vpop.f32.mrb[7].mxu1 }
 0x1e9   : > { %701 = vst.msk [vmem:[%s1151_s19 + $0x20] sm:$0xff] %vm696_vm2, %v650_v16  ;;  %v653_v20 = vadd.f32 %v840_v4, %v652_v19 }
 0x1ea   : > { %704 = vst.msk [vmem:[%s1151_s19 + $0x38] sm:$0xff] %vm696_vm2, %v661_v18 }
 0x1eb   : > { %702 = vst.msk [vmem:[%s1151_s19 + $0x28] sm:$0xff] %vm696_vm2, %v653_v20 }
 0x1ee   : > { %v904_v21 = vpop.f32.mrb[8].mxu1 }
 0x1ef   : > { %v674_v22 = vadd.f32 %v904_v21, %v840_v4  ;;  %v665_v23 = vpop.f32.mrb[9].mxu1 }
 0x1f0   : > { %v666_v24 = vadd.f32 %v840_v4, %v665_v23  ;;  %v905_v25 = vpop.f32.mrb[10].mxu1 }
 0x1f1   : > { %707 = vst.msk [vmem:[%s1151_s19 + $0x50] sm:$0xff] %vm696_vm2, %v674_v22  ;;  %v677_v26 = vadd.f32 %v905_v25, %v840_v4  ;;  %v668_v28 = vpop.f32.mrb[11].mxu1 }
 0x1f2   : > { %705 = vst.msk [vmem:[%s1151_s19 + $0x40] sm:$0xff] %vm696_vm2, %v666_v24  ;;  %v669_v29 = vadd.f32 %v840_v4, %v668_v28 }
 0x1f3   : > { %708 = vst.msk [vmem:[%s1151_s19 + $0x58] sm:$0xff] %vm696_vm2, %v677_v26 }
 0x1f4   : > { %706 = vst.msk [vmem:[%s1151_s19 + $0x48] sm:$0xff] %vm696_vm2, %v669_v29 }
 0x1f6   : > { %v908_v30 = vpop.f32.mrb[12].mxu1 }
 0x1f7   : > { %v690_v31 = vadd.f32 %v908_v30, %v840_v4  ;;  %v681_v32 = vpop.f32.mrb[13].mxu1 }
 0x1f8   : > { %v682_v33 = vadd.f32 %v840_v4, %v681_v32  ;;  %v909_v34 = vpop.f32.mrb[14].mxu1 }
 0x1f9   : > { %711 = vst.msk [vmem:[%s1151_s19 + $0x70] sm:$0xff] %vm696_vm2, %v690_v31  ;;  %v693_v27 = vadd.f32 %v909_v34, %v840_v4  ;;  %v684_v35 = vpop.f32.mrb[15].mxu1 }
 0x1fa   : > { %709 = vst.msk [vmem:[%s1151_s19 + $0x60] sm:$0xff] %vm696_vm2, %v682_v33  ;;  %v685_v36 = vadd.f32 %v840_v4, %v684_v35 }
 0x1fb   : > { %712 = vst.msk [vmem:[%s1151_s19 + $0x78] sm:$0xff] %vm696_vm2, %v693_v27 }
 0x1fc   : > { %710 = vst.msk [vmem:[%s1151_s19 + $0x68] sm:$0xff] %vm696_vm2, %v685_v36 }
 0x1fd PF: > { %s17_s21 = sadd.s32 1, %s991_s21  }
 0x1fe   : > { %p14_p4 = scmp.ge.s32.totalorder %s17_s21, 4  }
 0x200   :  { %16 = sbr.rel (!%p14_p4) target bundleno = 1 (0x1), region = 82 }

</bundles_post_ra>
